<compile_context>
chip_gen: v7x
topology: tpu7x:2x2x1
jax: 0.10.0
libtpu: 0.0.40
codegen_flags: <defaults>
</compile_context>

<pallas_src>
import jax
import jax.numpy as jnp
from jax.experimental import pallas as pl
from jax.experimental.pallas import tpu as pltpu


def depthwise_separable_conv_fwd(x, w_dw, w_pw):
    """x: (B, Cin, H, W) NCHW.  w_dw: (Cin, K) depthwise taps (torch (Cin,1,1,K)
    squeezed).  w_pw: (Cout, Cin) pointwise weights (torch (Cout,Cin,1,1) squeezed).
    Returns (B, Cout, H, W-K+1)."""
    B, Cin, H, W = x.shape
    Cout = w_pw.shape[0]
    K = w_dw.shape[1]
    Wout = W - K + 1
    N = B * H  # the (1,K) kernel never mixes H rows -> fold H into the batch grid

    # rows = channel (sublanes), lanes = time; one (Cin, W) plane per grid step
    x_p = jnp.transpose(x, (0, 2, 1, 3)).reshape(N, Cin, W)

    def kernel(x_ref, wdw_ref, wpw_ref, o_ref):
        xt = x_ref[0]            # (Cin, W)   channels on sublanes, time on lanes
        wdw = wdw_ref[...]       # (Cin, K)

        # depthwise (1,K) valid conv: K shifted scale-adds on the lane axis (VPU).
        # out[c, t] = sum_k wdw[c, k] * x[c, t + k]
        acc = wdw[:, 0:1] * xt[:, 0:Wout]
        for k in range(1, K):    # K is small & static -> fully unrolled
            acc = acc + wdw[:, k:k + 1] * xt[:, k:k + Wout]

        # pointwise 1x1 conv: one MXU matmul, output stays lane-dense in time.
        o_ref[0] = jnp.dot(wpw_ref[...], acc,
                           preferred_element_type=jnp.float32).astype(o_ref.dtype)

    out = pl.pallas_call(
        kernel,
        out_shape=jax.ShapeDtypeStruct((N, Cout, Wout), x.dtype),
        grid=(N,),
        in_specs=[
            pl.BlockSpec((1, Cin, W), lambda i: (i, 0, 0)),
            pl.BlockSpec((Cin, K), lambda i: (0, 0)),      # resident in VMEM
            pl.BlockSpec((Cout, Cin), lambda i: (0, 0)),    # resident in VMEM
        ],
        out_specs=pl.BlockSpec((1, Cout, Wout), lambda i: (i, 0, 0)),
        compiler_params=pltpu.CompilerParams(
            dimension_semantics=("parallel",)),
    )(x_p, w_dw, w_pw)

    return jnp.transpose(out.reshape(B, H, Cout, Wout), (0, 2, 1, 3))


def _reference(x, w_dw, w_pw):
    """Pure-JAX reference matching the PyTorch module (cross-correlation)."""
    B, Cin, H, W = x.shape
    K = w_dw.shape[1]
    Wout = W - K + 1
    dw = jnp.zeros((B, Cin, H, Wout), jnp.float32)
    for k in range(K):
        dw = dw + w_dw[None, :, None, k:k + 1] * x[:, :, :, k:k + Wout]
    return jnp.einsum('oc,bchw->bohw', w_pw, dw)


if __name__ == "__main__":
    # small shapes consistent with how EEGNet calls this block:
    # depthwise_separable_conv(F1*D, F2, kernel_size//4) on (B, F1*D, 1, T//4)
    BATCH, NIN, NOUT, H, W, K = 2, 8, 16, 1, 32, 4

    key = jax.random.PRNGKey(0)
    kx, kd, kp = jax.random.split(key, 3)
    x = jax.random.normal(kx, (BATCH, NIN, H, W), jnp.float32)
    w_dw = 0.3 * jax.random.normal(kd, (NIN, K), jnp.float32)    # depthwise taps
    w_pw = 0.3 * jax.random.normal(kp, (NOUT, NIN), jnp.float32)  # pointwise 1x1

    fwd = jax.jit(depthwise_separable_conv_fwd)
    out = jax.block_until_ready(fwd(x, w_dw, w_pw))

    ref = _reference(x, w_dw, w_pw)
    assert out.shape == (BATCH, NOUT, H, W - K + 1), out.shape
    assert bool(jnp.all(jnp.isfinite(out)))
    assert bool(jnp.allclose(out, ref, rtol=1e-3, atol=1e-3))
    print("KERNEL_OK")
</pallas_src>

<mosaic_0001>
module attributes {stable_mosaic.version = 11 : i64} {
  func.func @kernel(%arg0: i32, %arg1: memref<1x8x32xf32, #tpu.memory_space<vmem>>, %arg2: memref<8x4xf32, #tpu.memory_space<vmem>>, %arg3: memref<16x8xf32, #tpu.memory_space<vmem>>, %arg4: memref<1x16x29xf32, #tpu.memory_space<vmem>>) attributes {dimension_semantics = [#tpu.dimension_semantics<parallel>], iteration_bounds = array<i64: 2>, scalar_prefetch = 0 : i64, scratch_operands = 0 : i64, tpu.core_type = #tpu.core_type<tc>, window_params = [{transform_indices = @transform_0, window_bounds = array<i64: 1, 8, 32>}, {pipeline_mode = #tpu.pipeline_mode<synchronous>, transform_indices = @transform_1, window_bounds = array<i64: 8, 4>}, {pipeline_mode = #tpu.pipeline_mode<synchronous>, transform_indices = @transform_2, window_bounds = array<i64: 16, 8>}, {transform_indices = @transform_3, window_bounds = array<i64: 1, 16, 29>}]} {
    %c0 = arith.constant 0 : index
    %c0_0 = arith.constant 0 : index
    %c0_1 = arith.constant 0 : index
    %0 = vector.load %arg1[%c0, %c0_0, %c0_1] : memref<1x8x32xf32, #tpu.memory_space<vmem>>, vector<1x8x32xf32>
    %1 = vector.shape_cast %0 : vector<1x8x32xf32> to vector<8x32xf32>
    %c0_2 = arith.constant 0 : index
    %c0_3 = arith.constant 0 : index
    %2 = vector.load %arg2[%c0_2, %c0_3] : memref<8x4xf32, #tpu.memory_space<vmem>>, vector<8x4xf32>
    %3 = vector.extract_strided_slice %2 {offsets = [0, 0], sizes = [8, 1], strides = [1, 1]} : vector<8x4xf32> to vector<8x1xf32>
    %4 = vector.extract_strided_slice %1 {offsets = [0, 0], sizes = [8, 29], strides = [1, 1]} : vector<8x32xf32> to vector<8x29xf32>
    %5 = vector.broadcast %3 : vector<8x1xf32> to vector<8x29xf32>
    %6 = arith.mulf %5, %4 : vector<8x29xf32>
    %7 = vector.extract_strided_slice %2 {offsets = [0, 1], sizes = [8, 1], strides = [1, 1]} : vector<8x4xf32> to vector<8x1xf32>
    %8 = vector.extract_strided_slice %1 {offsets = [0, 1], sizes = [8, 29], strides = [1, 1]} : vector<8x32xf32> to vector<8x29xf32>
    %9 = vector.broadcast %7 : vector<8x1xf32> to vector<8x29xf32>
    %10 = arith.mulf %9, %8 : vector<8x29xf32>
    %11 = arith.addf %6, %10 : vector<8x29xf32>
    %12 = vector.extract_strided_slice %2 {offsets = [0, 2], sizes = [8, 1], strides = [1, 1]} : vector<8x4xf32> to vector<8x1xf32>
    %13 = vector.extract_strided_slice %1 {offsets = [0, 2], sizes = [8, 29], strides = [1, 1]} : vector<8x32xf32> to vector<8x29xf32>
    %14 = vector.broadcast %12 : vector<8x1xf32> to vector<8x29xf32>
    %15 = arith.mulf %14, %13 : vector<8x29xf32>
    %16 = arith.addf %11, %15 : vector<8x29xf32>
    %17 = vector.extract_strided_slice %2 {offsets = [0, 3], sizes = [8, 1], strides = [1, 1]} : vector<8x4xf32> to vector<8x1xf32>
    %18 = vector.extract_strided_slice %1 {offsets = [0, 3], sizes = [8, 29], strides = [1, 1]} : vector<8x32xf32> to vector<8x29xf32>
    %19 = vector.broadcast %17 : vector<8x1xf32> to vector<8x29xf32>
    %20 = arith.mulf %19, %18 : vector<8x29xf32>
    %21 = arith.addf %16, %20 : vector<8x29xf32>
    %c0_4 = arith.constant 0 : index
    %c0_5 = arith.constant 0 : index
    %22 = vector.load %arg3[%c0_4, %c0_5] : memref<16x8xf32, #tpu.memory_space<vmem>>, vector<16x8xf32>
    %cst = arith.constant dense<0.000000e+00> : vector<16x29xf32>
    %23 = tpu.matmul %22, %21, %cst {dimension_numbers = #tpu.dot_dimension_numbers<[1], [0], [0], [1], [0, 0, 1, 1], [], []>} : vector<16x8xf32>, vector<8x29xf32>, vector<16x29xf32> -> vector<16x29xf32>
    %c0_6 = arith.constant 0 : index
    %c0_7 = arith.constant 0 : index
    %c0_8 = arith.constant 0 : index
    %24 = vector.load %arg4[%c0_6, %c0_7, %c0_8] : memref<1x16x29xf32, #tpu.memory_space<vmem>>, vector<1x16x29xf32>
    %25 = vector.shape_cast %24 : vector<1x16x29xf32> to vector<16x29xf32>
    %26 = vector.shape_cast %23 : vector<16x29xf32> to vector<1x16x29xf32>
    tpu.vector_store %arg4[%c0_6, %c0_7, %c0_8], %26 {strides = array<i32>} : memref<1x16x29xf32, #tpu.memory_space<vmem>>, vector<1x16x29xf32>,
    return
  }
  func.func @transform_0(%arg0: i32) -> (i32, i32, i32) {
    %c0_i32 = arith.constant 0 : i32
    %c0_i32_0 = arith.constant 0 : i32
    %c0_i32_1 = arith.constant 0 : i32
    return %arg0, %c0_i32, %c0_i32_0 : i32, i32, i32
  }
  func.func @transform_1(%arg0: i32) -> (i32, i32) {
    %c0_i32 = arith.constant 0 : i32
    %c0_i32_0 = arith.constant 0 : i32
    %c0_i32_1 = arith.constant 0 : i32
    return %c0_i32, %c0_i32_0 : i32, i32
  }
  func.func @transform_2(%arg0: i32) -> (i32, i32) {
    %c0_i32 = arith.constant 0 : i32
    %c0_i32_0 = arith.constant 0 : i32
    %c0_i32_1 = arith.constant 0 : i32
    return %c0_i32, %c0_i32_0 : i32, i32
  }
  func.func @transform_3(%arg0: i32) -> (i32, i32, i32) {
    %c0_i32 = arith.constant 0 : i32
    %c0_i32_0 = arith.constant 0 : i32
    %c0_i32_1 = arith.constant 0 : i32
    return %arg0, %c0_i32, %c0_i32_0 : i32, i32, i32
  }
}

</mosaic_0001>

<bundles_post_ra>
// kernel: depthwise_separable_conv_fwd.1
= control target key start
LH: loop header
LB: loop body
LE: loop exit
PB: predicated region body
PF: predicated region fallthrough
CT: control target
= control target key end

     0   :  { %8 = vsyncpa [#allocation3], 0  ;;  %s650_s0 = inlined_call_operand.vmem [shape: f32[2,8,32], index: 0, kind: input, shape index: {}]   ;;  %s651_s1 = inlined_call_operand.vmem [shape: f32[8,4], index: 1, kind: input, shape index: {}]   ;;  %s652_s2 = inlined_call_operand.vmem [shape: f32[16,8], index: 2, kind: input, shape index: {}]   ;;  %s653_s3 = inlined_call_operand.hbm [shape: f32[2,16,29], index: 3, kind: output, shape index: {}]  }
   0x1   :  { %10 = vsyncpa [#allocation3 + $0x1], 0  ;;  %s536_s12 = smov 0   ;;  %s538_s13 = smov 0  }
   0x2   :  { %s540_s14 = smov 0   ;;  %s542_s15 = smov 0  }
   0x3 LB: > { %s557_s16 = sadd.s32 4294967295, %s504_s15   ;;  %s367_s17 = sadd.s32 4294967294, %s504_s15   ;;  %s504_s15 = sphi %s542_s15, %s659_s15   ;;  %s500_s14 = sphi %s540_s14, %s658_s14   ;;  %s496_s13 = sphi %s538_s13, %s657_s13   ;;  %s492_s12 = sphi %s536_s12, %s656_s12  }
   0x4   : > { %s561_s18 = sadd.s32 1, %s504_s15   ;;  %s91_s19 = sadd.s32 1, %s500_s14 }
   0x5   : > { %s88_s20 = ssub.s32 %s504_s15, %s561_s18  ;;  %p101_p0 = scmp.ne.s32.totalorder %s500_s14, %s496_s13 }
   0x6   : > { %p89_p1 = scmp.eq.s32.totalorder %s88_s20, 0  ;;  %p102_p2 = scmp.eq.s32.totalorder %s557_s16, 1 }
   0x7   : > { %p107_p3 = scmp.ne.s32.totalorder %s496_s13, %s492_s12  ;;  %p108_p4 = scmp.eq.s32.totalorder %s367_s17, 1 }
   0x8   : > { %s572_s21 = scalar_select %p89_p1, %s500_s14, %s91_s19  }
   0x9   : > { %p574_p5 = por %p102_p2, %p101_p0  ;;  %p578_p6 = por %p108_p4, %p107_p3 }
   0xa   : > { %p370_p7 = scmp.ge.s32.totalorder %s504_s15, 1  ;;  %p139_p8 = scmp.lt.s32.totalorder %s504_s15, 3 }
   0xc   : > { %p140_p9 = pnand %p370_p7, %p139_p8 }
   0xd   : > { %v167_v0 = vld [vmem:[%s651_s1] sm:$0xff] (!%p140_p9)  ;;  %v506_v1 = vmov (!%p140_p9), 1   ;;  %v507_v2 = vmov (!%p140_p9), 3   ;;  %v508_v3 = vmov (!%p140_p9), 2   ;;  %v509_v4 = vmov (!%p140_p9), 0   ;;  %p162_p10 = scmp.lt.s32.totalorder (!%p140_p9), %s557_s16, 1 }
   0xe   : > { %143 = sbr.rel (%p140_p9) target bundleno = 499 (0x1f3), region = 32  ;;  %437 = vset.pattern.permute.xlu0 (!%p140_p9), %v506_v1  ;;  %439 = vset.pattern.permute.xlu1 (!%p140_p9), %v507_v2  ;;  %v204_v6 = vld [vmem:[%s652_s2] sm:$0xff] (!%p140_p9)  ;;  %vm206_vm0 = vcmask (!%p140_p9), 64512   ;;  %s510_s6 = smov (!%p140_p9), 127   ;;  %v205_v21 = vld [vmem:[%s652_s2 + $0x8] sm:$0xff] (!%p140_p9)  ;;  %vm288_vm1 = vcmask (!%p140_p9), 236544  }
   0xf   : > { %175 = vperm.xlu0 (!%p140_p9), %437, %v167_v0   ;;  %195 = vperm.xlu1 (!%p140_p9), %439, %v167_v0   ;;  %s511_s7 = smov (!%p140_p9), 125   ;;  %s512_s8 = smov (!%p140_p9), 126  }
  0x10   : > { %386 = vmatprep.mubr.msk.f32.mxu0 (!%p140_p9), %vm206_vm0, %v204_v6  ;;  %s159_s11 = sand.u32 (!%p140_p9), 1, %s496_s13   ;;  %s380_s24 = sshll.u32 (!%p140_p9), %s557_s16, 8 }
  0x11   : > { %s371_s17 = sshll.u32 (!%p140_p9), %s159_s11, 4  ;;  %s609_s28 = scalar_lea.sflag (!%p140_p9), [#allocation3], %s159_s11 }
  0x12   : > { %s161_s19 = scalar_lea.vmem (!%p140_p9), [#allocation2], %s371_s17 }
  0x13   : > { %438 = vset.pattern.permute.xlu0 (!%p140_p9), %v508_v3  ;;  %440 = vset.pattern.permute.xlu1 (!%p140_p9), %v509_v4  ;;  %s305_s20 = sshll.u32 (!%p140_p9), %s161_s19, 4  ;;  %s602_s20 = int_to_ptr.vmem [resolvable:$true] %s305_s20 }
  0x14   : > { %185 = vperm.xlu0 (!%p140_p9), %438, %v167_v0   ;;  %170 = vperm.xlu1 (!%p140_p9), %440, %v167_v0   ;;  %s442_s29 = scalar_lea.vmem (!%p140_p9), %s602_s20, 256 }
  0x15   : > { %s163_s26 = scalar_select %p162_p10, %s557_s16, 1 }
  0x16   : > { %p443_p11 = scmp.ne.s32.totalorder %s602_s20, %s442_s29  ;;  %s513_s16 = smov [#allocation2]  }
  0x17   : > { %s372_s27 = sshll.u32 %s163_s26, 3 }
  0x18   : > { %441 = vset.pattern.permute.xlu0 %v507_v2  ;;  %s165_s30 = scalar_lea.vmem %s650_s0, %s372_s27  ;;  %s607_s27 = scalar_lea.hbm %s653_s3, %s380_s24 }
  0x19   : > { %v166_v5 = vld [vmem:[%s165_s30] sm:$0xff]  ;;  %p444_p12 = pnand %p443_p11, %p574_p5  ;;  %s446_s30 = sshll.u32 %s513_s16, 4  ;;  %s447_s30 = int_to_ptr.vmem [resolvable:$false] %s446_s30 }
  0x1a   : > { %s448_s4 = scalar_lea.vmem %s447_s30, 512  ;;  %p449_p0 = scmp.lt.s32.totalorder %s602_s20, %s447_s30 }
  0x1b   : > { %p445_p13 = pneg %p444_p12  ;;  %p450_p1 = scmp.lt.s32.totalorder %s448_s4, %s442_s29 }
  0x1d   : > { %p451_p2 = por %p450_p1, %p449_p0 }
  0x1f   : > { %p452_p3 = pnand %p451_p2, %p445_p13 }
  0x8e   : > { %v176_v7 = vpop.permute.xlu0 %175  ;;  %v196_v8 = vpop.permute.xlu1 %195 }
  0x8f   : > { %v178_v9 = vmul.f32 %v176_v7, %v166_v5  ;;  %v198_v10 = vmul.f32 %v196_v8, %v166_v5 }
  0x91   : > { %180 = vrot.lane.b32.xlu1 %v178_v9, %s510_s6 }
  0x93   : > { %v186_v11 = vpop.permute.xlu0 %185  ;;  %v171_v13 = vpop.permute.xlu1 %170 }
  0x94   : > { %v188_v12 = vmul.f32 %v186_v11, %v166_v5  ;;  %v173_v14 = vmul.f32 %v171_v13, %v166_v5 }
  0x95   : > { %200 = vrot.lane.b32.xlu1 %v198_v10, %s511_s7 }
  0x96   : > { %190 = vrot.lane.b32.xlu0 %v188_v12, %s512_s8 }
 0x103   : > { %v181_v15 = vpop.permute.xlu1 %180 }
 0x104   : > { %v183_v16 = vadd.f32 %v181_v15, %v173_v14 }
 0x107   : > { %v201_v18 = vpop.permute.xlu1 %200 }
 0x108   : > { %v191_v17 = vpop.permute.xlu0 %190 }
 0x109   : > { %v193_v19 = vadd.f32 %v191_v17, %v183_v16 }
 0x10b   : > { %v203_v20 = vadd.f32 %v201_v18, %v193_v19 }
 0x10d   : > { %384 = vmatprep.subr.mxu0 %v203_v20 }
 0x10e   : > { %385 = vmatpush3.msra.mxu0 %v203_v20 }
 0x10f   : > { %387 = vmatmul.mubr.msk.f32.vlgmr.msra.gmra.mrb[0].mxu0 %vm206_vm0, %v205_v21 }
 0x1e2   : > { %v388_v22 = vpop.f32.mrb[0].mxu0 }
 0x1e3   : > { %290 = vst.msk [vmem:[%s161_s19 + $0x8] sm:$0xff] %vm288_vm1, %v388_v22  ;;  %v279_v23 = vpop.f32.mrb[1].mxu0 }
 0x1e4   : > { %289 = vst.msk [vmem:[%s161_s19] sm:$0xff] %vm288_vm1, %v279_v23 }
 0x1e5   : > { %455 = shalt.err (!%p452_p3)
}
 0x1e6   : > { %s456_s5 = scalar_lea.hbm %s607_s27, 256  ;;  %s460_s8 = scalar_lea.hbm %s653_s3, 512 }
 0x1e7   : > { %p457_p4 = scmp.ne.s32.totalorder %s607_s27, %s456_s5  ;;  %p461_p9 = scmp.lt.u32.totalorder %s607_s27, %s653_s3 }
 0x1e8   : > { %p462_p10 = scmp.lt.u32.totalorder %s460_s8, %s456_s5  ;;  %p464_p12 = scmp.lt.u32.totalorder %s456_s5, %s607_s27 }
 0x1e9   : > { %p458_p7 = pnand %p457_p4, %p574_p5 }
 0x1ea   : > { %p463_p11 = por %p462_p10, %p461_p9 }
 0x1eb   : > { %p459_p8 = pneg %p458_p7 }
 0x1ec   : > { %p465_p13 = por %p464_p12, %p463_p11 }
 0x1ee   : > { %p466_p0 = pnand %p465_p13, %p459_p8 }
 0x1f0   : > { %469 = shalt.err (!%p466_p0)
}
 0x1f1   : > { %s514_s11 = smov 128   ;;  %s515_s17 = smov 8  }
 0x1f2   : > { %389 = dma.vmem_to_hbm [thread:$0]  (%p574_p5), %s602_s20, 256, %s607_s27, %s609_s28, %s514_s11, %s514_s11, %s515_s17  }
 0x1f3 PF: > { %p395_p1 = scmp.ge.s32.totalorder %s504_s15, 2  ;;  %s320_s19 = sand.u32 1, %s492_s12  }
 0x1f4   : > { %s321_s24 = scalar_lea.sflag [#allocation3], %s320_s19 }
 0x1f5   : > { %p392_p2 = pnand %p395_p1, %p578_p6 }
 0x1f7   : > { %487 = dma.done.wait (!%p392_p2), %s321_s24, 256  }
 0x1f8   : > { %489 = vsyncadd (!%p392_p2), %s321_s24, 4294967040  ;;  %p13_p3 = scmp.ge.s32.totalorder %s561_s18, 4   ;;  %s656_s12 = smov %s496_s13 }
 0x1f9   : > { %s657_s13 = smov %s500_s14  ;;  %s658_s14 = smov %s572_s21 }
 0x1fa   : > { %s659_s15 = smov %s561_s18  ;;  %15 = sbr.rel (!%p13_p3) target bundleno = 3 (0x3), region = 67 }
 0x201   :  { %326 = vsyncpa [#allocation3], 1 }
 0x202   :  { %328 = vsyncpa [#allocation3 + $0x1], 1 }

</bundles_post_ra>
